<compile_context>
chip_gen: v6e
topology: v6e:2x2x1
jax: 0.10.0
libtpu: 0.0.40
codegen_flags: <defaults>
</compile_context>

<pallas_src>
import functools

import jax
import jax.numpy as jnp
from jax.experimental import pallas as pl
from jax.experimental.pallas import tpu as pltpu


def _round_up(x, m):
    return ((x + m - 1) // m) * m


def _pick_row_tile(n, itemsize, budget_bytes=8 * 1024 * 1024, cap=2048):
    """Row tile sized against the true VMEM footprint of the input buffers.

    Each of the 4 row-slab blocks is padded to 128 lanes in VMEM regardless of
    its (unpadded) HBM width and is double-buffered by the pipeline, so the
    VMEM cost per row is 4 * 128 * itemsize * 2.  `budget_bytes` only covers
    the input buffers; kernel intermediates live in the remaining
    vmem_limit_bytes headroom.
    """
    per_row = 4 * 128 * itemsize * 2
    sub = max(8, 32 // itemsize)              # sublane multiple for the dtype
    tn = budget_bytes // per_row
    tn = max(sub, (tn // sub) * sub)
    tn = min(tn, cap, _round_up(n, sub))
    return int(tn)


def _relaxed_loss_kernel(logits_ref, tdist_ref, resid_ref, treg_ref,
                         centers_ref, kl_out_ref, mse_out_ref, *, n_valid):
    pid = pl.program_id(0)

    logits = logits_ref[...].astype(jnp.float32)      # (TN, K)
    tdist = tdist_ref[...].astype(jnp.float32)        # (TN, K)
    resid = resid_ref[...].astype(jnp.float32)        # (TN, D)
    treg = treg_ref[...].astype(jnp.float32)          # (TN, D)
    centers = centers_ref[...].astype(jnp.float32)    # (K, D)

    tn, k = logits.shape
    d = resid.shape[1]

    # Rows past the original N (ragged tail of the last block) are masked out
    # BEFORE any reduction so tail garbage (possibly NaN/Inf) never leaks in.
    row_ids = pid * tn + jax.lax.broadcasted_iota(jnp.int32, (tn, 1), 0)
    valid = row_ids < n_valid                          # (TN, 1) bool

    # ---- l1 elements: KLDiv(log_softmax(logits), tdist) --------------------
    rowmax = jnp.max(logits, axis=1, keepdims=True)
    z = logits - rowmax
    logp = z - jnp.log(jnp.sum(jnp.exp(z), axis=1, keepdims=True))
    # PyTorch KLDiv pointwise term: t * (log t - logp), defined as 0 at t == 0.
    kl_elem = jnp.where(jnp.logical_and(valid, tdist > 0.0),
                        tdist * (jnp.log(tdist) - logp), 0.0)        # (TN, K)

    # ---- gather cluster centers at argmax(logits) via one-hot matmul -------
    iota_k = jax.lax.broadcasted_iota(jnp.int32, (tn, k), 1)
    # first index achieving the row max (matches torch argmax tie behaviour)
    first_idx = jnp.min(jnp.where(logits == rowmax, iota_k, k),
                        axis=1, keepdims=True)                       # (TN, 1)
    onehot = (iota_k == first_idx).astype(jnp.float32)               # (TN, K)
    y = jnp.dot(onehot, centers, preferred_element_type=jnp.float32)  # (TN, D)

    # ---- l2 elements: squared error of (y + residual) vs target ------------
    diff = (y + resid) - treg
    sq = jnp.where(valid, diff * diff, 0.0)                          # (TN, D)

    # ---- per-tile partial sums, reduced over the row (sublane) axis --------
    kl_sum = jnp.sum(kl_elem, axis=0, keepdims=True)                 # (1, K)
    mse_sum = jnp.sum(sq, axis=0, keepdims=True)                     # (1, D)
    # Embed into an (8, K)/(8, D) aligned output block: row 0 holds the sums,
    # rows 1..7 are zero, so the wrapper can simply sum the whole array.
    row0_k = jax.lax.broadcasted_iota(jnp.int32, (8, k), 0) == 0
    row0_d = jax.lax.broadcasted_iota(jnp.int32, (8, d), 0) == 0
    kl_out_ref[...] = jnp.where(row0_k, jnp.broadcast_to(kl_sum, (8, k)), 0.0)
    mse_out_ref[...] = jnp.where(row0_d, jnp.broadcast_to(mse_sum, (8, d)), 0.0)


def relaxed_loss(logits, target_dist, residual, target_reg, centers, alpha,
                 *, row_tile=None, vmem_limit_bytes=48 * 1024 * 1024):
    """l1 + alpha * l2 for the RelaXedLoss module (my_loss = MSELoss(mean))."""
    n, k = logits.shape
    kc, d = centers.shape
    assert kc == k and target_dist.shape == (n, k)
    assert residual.shape == (n, d) and target_reg.shape == (n, d)

    itemsize = max(jnp.dtype(a.dtype).itemsize
                   for a in (logits, target_dist, residual, target_reg))
    tn = int(row_tile) if row_tile is not None else _pick_row_tile(n, itemsize)
    grid = (n + tn - 1) // tn

    kernel = functools.partial(_relaxed_loss_kernel, n_valid=int(n))

    kl_parts, mse_parts = pl.pallas_call(
        kernel,
        out_shape=(jax.ShapeDtypeStruct((8 * grid, k), jnp.float32),
                   jax.ShapeDtypeStruct((8 * grid, d), jnp.float32)),
        grid_spec=pltpu.PrefetchScalarGridSpec(
            num_scalar_prefetch=0,
            grid=(grid,),
            in_specs=[
                pl.BlockSpec((tn, k), lambda i: (i, 0)),   # logits
                pl.BlockSpec((tn, k), lambda i: (i, 0)),   # target dist
                pl.BlockSpec((tn, d), lambda i: (i, 0)),   # residual
                pl.BlockSpec((tn, d), lambda i: (i, 0)),   # target reg
                pl.BlockSpec((k, d), lambda i: (0, 0)),    # centers (resident)
            ],
            out_specs=[
                pl.BlockSpec((8, k), lambda i: (i, 0)),    # KL partials
                pl.BlockSpec((8, d), lambda i: (i, 0)),    # MSE partials
            ],
        ),
        compiler_params=pltpu.CompilerParams(
            dimension_semantics=("parallel",),             # v7x: 2-TC row split
            vmem_limit_bytes=vmem_limit_bytes,
        ),
    )(logits, target_dist, residual, target_reg, centers)

    l1 = jnp.sum(kl_parts) * (1.0 / (n * k))   # KLDiv 'mean' divides by N*K
    l2 = jnp.sum(mse_parts) * (1.0 / (n * d))  # MSE   'mean' divides by N*D
    return l1 + jnp.asarray(alpha, jnp.float32) * l2


def relaxed_loss_ref(logits, target_dist, residual, target_reg, centers, alpha):
    """Pure-JAX reference mirroring the PyTorch module."""
    logp = jax.nn.log_softmax(logits, axis=1)
    kl_elem = jnp.where(target_dist > 0.0,
                        target_dist * (jnp.log(target_dist) - logp), 0.0)
    l1 = jnp.mean(kl_elem)
    ind = jnp.argmax(logits, axis=1)
    y = centers[ind]
    l2 = jnp.mean(((y + residual) - target_reg) ** 2)
    return l1 + alpha * l2


def _make_inputs(key, n, k, d):
    k1, k2, k3, k4, k5 = jax.random.split(key, 5)
    logits = jax.random.normal(k1, (n, k), dtype=jnp.float32)       # ypred[0]
    target_dist = jax.nn.softmax(                                   # ytrue[0]
        jax.random.normal(k2, (n, k), dtype=jnp.float32), axis=1)
    residual = jax.random.normal(k3, (n, d), dtype=jnp.float32)     # ypred[1]
    target_reg = jax.random.normal(k4, (n, d), dtype=jnp.float32)   # ytrue[1]
    # Deterministic synthetic kmeans cluster centers (K, D); no .pkl load.
    centers = jax.random.normal(k5, (k, d), dtype=jnp.float32)
    return logits, target_dist, residual, target_reg, centers


if __name__ == "__main__":
    alpha = 0.5
    key = jax.random.PRNGKey(0)
    key_small, key_big = jax.random.split(key)

    # Case 1: module-native tiny shapes (single grid step).
    N, K, D = 8, 16, 8
    args = _make_inputs(key_small, N, K, D)
    out = jax.block_until_ready(relaxed_loss(*args, alpha))
    ref = relaxed_loss_ref(*args, alpha)
    assert jnp.allclose(out, ref, rtol=1e-5, atol=1e-5), (out, ref)

    # Case 2: multi-step parallel grid with a ragged tail (700 = 2*256 + 188),
    # small forced row tile to exercise tail masking and per-tile partials.
    N2, K2, D2 = 700, 16, 8
    args2 = _make_inputs(key_big, N2, K2, D2)
    out2 = jax.block_until_ready(relaxed_loss(*args2, alpha, row_tile=256))
    ref2 = relaxed_loss_ref(*args2, alpha)
    assert jnp.allclose(out2, ref2, rtol=1e-4, atol=1e-5), (out2, ref2)

    # Case 3: same data through the auto-sized tile path (one partial block).
    out3 = jax.block_until_ready(relaxed_loss(*args2, alpha))
    assert jnp.allclose(out3, ref2, rtol=1e-4, atol=1e-5), (out3, ref2)

    print("KERNEL_OK")
</pallas_src>

<mosaic_0001>
module attributes {stable_mosaic.version = 11 : i64} {
  func.func @_relaxed_loss_kernel(%arg0: i32, %arg1: memref<8x16xf32, #tpu.memory_space<vmem>>, %arg2: memref<8x16xf32, #tpu.memory_space<vmem>>, %arg3: memref<8x8xf32, #tpu.memory_space<vmem>>, %arg4: memref<8x8xf32, #tpu.memory_space<vmem>>, %arg5: memref<16x8xf32, #tpu.memory_space<vmem>>, %arg6: memref<8x16xf32, #tpu.memory_space<vmem>>, %arg7: memref<8x8xf32, #tpu.memory_space<vmem>>) attributes {dimension_semantics = [#tpu.dimension_semantics<parallel>], iteration_bounds = array<i64: 1>, scalar_prefetch = 0 : i64, scratch_operands = 0 : i64, tpu.core_type = #tpu.core_type<tc>, window_params = [{transform_indices = @transform_0, window_bounds = array<i64: 8, 16>}, {transform_indices = @transform_1, window_bounds = array<i64: 8, 16>}, {transform_indices = @transform_2, window_bounds = array<i64: 8, 8>}, {transform_indices = @transform_3, window_bounds = array<i64: 8, 8>}, {pipeline_mode = #tpu.pipeline_mode<synchronous>, transform_indices = @transform_4, window_bounds = array<i64: 16, 8>}, {transform_indices = @transform_5, window_bounds = array<i64: 8, 16>}, {transform_indices = @transform_6, window_bounds = array<i64: 8, 8>}]} {
    %c0 = arith.constant 0 : index
    %c0_0 = arith.constant 0 : index
    %0 = vector.load %arg1[%c0, %c0_0] : memref<8x16xf32, #tpu.memory_space<vmem>>, vector<8x16xf32>
    %c0_1 = arith.constant 0 : index
    %c0_2 = arith.constant 0 : index
    %1 = vector.load %arg2[%c0_1, %c0_2] : memref<8x16xf32, #tpu.memory_space<vmem>>, vector<8x16xf32>
    %c0_3 = arith.constant 0 : index
    %c0_4 = arith.constant 0 : index
    %2 = vector.load %arg3[%c0_3, %c0_4] : memref<8x8xf32, #tpu.memory_space<vmem>>, vector<8x8xf32>
    %c0_5 = arith.constant 0 : index
    %c0_6 = arith.constant 0 : index
    %3 = vector.load %arg4[%c0_5, %c0_6] : memref<8x8xf32, #tpu.memory_space<vmem>>, vector<8x8xf32>
    %c0_7 = arith.constant 0 : index
    %c0_8 = arith.constant 0 : index
    %4 = vector.load %arg5[%c0_7, %c0_8] : memref<16x8xf32, #tpu.memory_space<vmem>>, vector<16x8xf32>
    %c8_i32 = arith.constant 8 : i32
    %5 = arith.muli %arg0, %c8_i32 : i32
    %6 = tpu.iota {dimensions = array<i32: 0>} : vector<8x1xi32>
    %7 = vector.broadcast %5 : i32 to vector<8x1xi32>
    %8 = arith.addi %7, %6 : vector<8x1xi32>
    %c8_i32_9 = arith.constant 8 : i32
    %9 = vector.broadcast %c8_i32_9 : i32 to vector<8x1xi32>
    %10 = arith.cmpi slt, %8, %9 : vector<8x1xi32>
    %cst = arith.constant dense<0xFF800000> : vector<8xf32>
    %11 = vector.multi_reduction <maximumf>, %0, %cst [1] : vector<8x16xf32> to vector<8xf32>
    %12 = vector.shape_cast %11 : vector<8xf32> to vector<8x1xf32>
    %13 = vector.broadcast %12 : vector<8x1xf32> to vector<8x16xf32>
    %14 = arith.subf %0, %13 : vector<8x16xf32>
    %15 = math.exp %14 : vector<8x16xf32>
    %cst_10 = arith.constant dense<0.000000e+00> : vector<8xf32>
    %16 = vector.multi_reduction <add>, %15, %cst_10 [1] : vector<8x16xf32> to vector<8xf32>
    %17 = vector.shape_cast %16 : vector<8xf32> to vector<8x1xf32>
    %18 = math.log %17 : vector<8x1xf32>
    %19 = vector.broadcast %18 : vector<8x1xf32> to vector<8x16xf32>
    %20 = arith.subf %14, %19 : vector<8x16xf32>
    %cst_11 = arith.constant 0.000000e+00 : f32
    %21 = vector.broadcast %cst_11 : f32 to vector<8x16xf32>
    %22 = arith.cmpf ogt, %1, %21 : vector<8x16xf32>
    %23 = vector.broadcast %10 : vector<8x1xi1> to vector<8x16xi1>
    %24 = arith.andi %23, %22 : vector<8x16xi1>
    %25 = math.log %1 : vector<8x16xf32>
    %26 = arith.subf %25, %20 : vector<8x16xf32>
    %27 = arith.mulf %1, %26 : vector<8x16xf32>
    %cst_12 = arith.constant 0.000000e+00 : f32
    %28 = vector.broadcast %cst_12 : f32 to vector<8x16xf32>
    %29 = arith.select %24, %27, %28 : vector<8x16xi1>, vector<8x16xf32>
    %30 = tpu.iota {dimensions = array<i32: 1>} : vector<8x16xi32>
    %31 = vector.broadcast %12 : vector<8x1xf32> to vector<8x16xf32>
    %32 = arith.cmpf oeq, %0, %31 : vector<8x16xf32>
    %c16_i32 = arith.constant 16 : i32
    %33 = vector.broadcast %c16_i32 : i32 to vector<8x16xi32>
    %34 = arith.select %32, %30, %33 : vector<8x16xi1>, vector<8x16xi32>
    %cst_13 = arith.constant dense<2147483647> : vector<8xi32>
    %35 = vector.multi_reduction <minsi>, %34, %cst_13 [1] : vector<8x16xi32> to vector<8xi32>
    %36 = vector.shape_cast %35 : vector<8xi32> to vector<8x1xi32>
    %37 = vector.broadcast %36 : vector<8x1xi32> to vector<8x16xi32>
    %38 = arith.cmpi eq, %30, %37 : vector<8x16xi32>
    %39 = arith.extui %38 : vector<8x16xi1> to vector<8x16xi32>
    %40 = arith.sitofp %39 : vector<8x16xi32> to vector<8x16xf32>
    %cst_14 = arith.constant dense<0.000000e+00> : vector<8x8xf32>
    %41 = tpu.matmul %40, %4, %cst_14 {dimension_numbers = #tpu.dot_dimension_numbers<[1], [0], [0], [1], [0, 0, 1, 1], [], []>} : vector<8x16xf32>, vector<16x8xf32>, vector<8x8xf32> -> vector<8x8xf32>
    %42 = arith.addf %41, %2 : vector<8x8xf32>
    %43 = arith.subf %42, %3 : vector<8x8xf32>
    %44 = arith.mulf %43, %43 : vector<8x8xf32>
    %cst_15 = arith.constant 0.000000e+00 : f32
    %45 = vector.shape_cast %10 : vector<8x1xi1> to vector<8x1xi1>
    %46 = vector.broadcast %45 : vector<8x1xi1> to vector<8x8xi1>
    %47 = vector.broadcast %cst_15 : f32 to vector<8x8xf32>
    %48 = arith.select %46, %44, %47 : vector<8x8xi1>, vector<8x8xf32>
    %cst_16 = arith.constant dense<0.000000e+00> : vector<16xf32>
    %49 = vector.multi_reduction <add>, %29, %cst_16 [0] : vector<8x16xf32> to vector<16xf32>
    %50 = vector.shape_cast %49 : vector<16xf32> to vector<1x16xf32>
    %cst_17 = arith.constant dense<0.000000e+00> : vector<8xf32>
    %51 = vector.multi_reduction <add>, %48, %cst_17 [0] : vector<8x8xf32> to vector<8xf32>
    %52 = vector.shape_cast %51 : vector<8xf32> to vector<1x8xf32>
    %53 = tpu.iota {dimensions = array<i32: 0>} : vector<8x16xi32>
    %c0_i32 = arith.constant 0 : i32
    %54 = vector.broadcast %c0_i32 : i32 to vector<8x16xi32>
    %55 = arith.cmpi eq, %53, %54 : vector<8x16xi32>
    %56 = tpu.iota {dimensions = array<i32: 0>} : vector<8x8xi32>
    %c0_i32_18 = arith.constant 0 : i32
    %57 = vector.broadcast %c0_i32_18 : i32 to vector<8x8xi32>
    %58 = arith.cmpi eq, %56, %57 : vector<8x8xi32>
    %59 = vector.shape_cast %50 : vector<1x16xf32> to vector<1x16xf32>
    %60 = vector.broadcast %59 : vector<1x16xf32> to vector<8x16xf32>
    %cst_19 = arith.constant 0.000000e+00 : f32
    %61 = vector.broadcast %cst_19 : f32 to vector<8x16xf32>
    %62 = arith.select %55, %60, %61 : vector<8x16xi1>, vector<8x16xf32>
    %c0_20 = arith.constant 0 : index
    %c0_21 = arith.constant 0 : index
    %63 = vector.load %arg6[%c0_20, %c0_21] : memref<8x16xf32, #tpu.memory_space<vmem>>, vector<8x16xf32>
    tpu.vector_store %arg6[%c0_20, %c0_21], %62 {strides = array<i32>} : memref<8x16xf32, #tpu.memory_space<vmem>>, vector<8x16xf32>,
    %64 = vector.shape_cast %52 : vector<1x8xf32> to vector<1x8xf32>
    %65 = vector.broadcast %64 : vector<1x8xf32> to vector<8x8xf32>
    %cst_22 = arith.constant 0.000000e+00 : f32
    %66 = vector.broadcast %cst_22 : f32 to vector<8x8xf32>
    %67 = arith.select %58, %65, %66 : vector<8x8xi1>, vector<8x8xf32>
    %c0_23 = arith.constant 0 : index
    %c0_24 = arith.constant 0 : index
    %68 = vector.load %arg7[%c0_23, %c0_24] : memref<8x8xf32, #tpu.memory_space<vmem>>, vector<8x8xf32>
    tpu.vector_store %arg7[%c0_23, %c0_24], %67 {strides = array<i32>} : memref<8x8xf32, #tpu.memory_space<vmem>>, vector<8x8xf32>,
    return
  }
  func.func @transform_0(%arg0: i32) -> (i32, i32) {
    %c0_i32 = arith.constant 0 : i32
    %c0_i32_0 = arith.constant 0 : i32
    return %arg0, %c0_i32 : i32, i32
  }
  func.func @transform_1(%arg0: i32) -> (i32, i32) {
    %c0_i32 = arith.constant 0 : i32
    %c0_i32_0 = arith.constant 0 : i32
    return %arg0, %c0_i32 : i32, i32
  }
  func.func @transform_2(%arg0: i32) -> (i32, i32) {
    %c0_i32 = arith.constant 0 : i32
    %c0_i32_0 = arith.constant 0 : i32
    return %arg0, %c0_i32 : i32, i32
  }
  func.func @transform_3(%arg0: i32) -> (i32, i32) {
    %c0_i32 = arith.constant 0 : i32
    %c0_i32_0 = arith.constant 0 : i32
    return %arg0, %c0_i32 : i32, i32
  }
  func.func @transform_4(%arg0: i32) -> (i32, i32) {
    %c0_i32 = arith.constant 0 : i32
    %c0_i32_0 = arith.constant 0 : i32
    %c0_i32_1 = arith.constant 0 : i32
    return %c0_i32, %c0_i32_0 : i32, i32
  }
  func.func @transform_5(%arg0: i32) -> (i32, i32) {
    %c0_i32 = arith.constant 0 : i32
    %c0_i32_0 = arith.constant 0 : i32
    return %arg0, %c0_i32 : i32, i32
  }
  func.func @transform_6(%arg0: i32) -> (i32, i32) {
    %c0_i32 = arith.constant 0 : i32
    %c0_i32_0 = arith.constant 0 : i32
    return %arg0, %c0_i32 : i32, i32
  }
}

</mosaic_0001>

<bundles_post_ra>
// kernel: tpu_custom_call.1
= control target key start
LH: loop header
LB: loop body
LE: loop exit
PB: predicated region body
PF: predicated region fallthrough
CT: control target
= control target key end

     0   :  { %12 = vsyncpa [#allocation3], 0  ;;  %s378_s0 = inlined_call_operand.vmem [shape: f32[8,16], index: 0, kind: input, shape index: {}]   ;;  %s379_s1 = inlined_call_operand.vmem [shape: f32[8,16], index: 1, kind: input, shape index: {}]   ;;  %s380_s2 = inlined_call_operand.vmem [shape: f32[8,8], index: 2, kind: input, shape index: {}]   ;;  %s381_s3 = inlined_call_operand.hbm [shape: f32[8,8], index: 3, kind: input, shape index: {}]   ;;  %s382_s4 = inlined_call_operand.vmem [shape: f32[16,8], index: 4, kind: input, shape index: {}]   ;;  %s383_s5 = inlined_call_operand.hbm [shape: f32[8,16], index: 5, kind: output, shape index: {0}]   ;;  %s384_s6 = inlined_call_operand.hbm [shape: f32[8,8], index: 6, kind: output, shape index: {1}]  }
   0x1   :  { %13 = vsyncpa [#allocation4], 0 }
   0x2   :  { %14 = vsyncpa [#allocation7], 0  ;;  %s306_s21 = smov [#allocation2]  }
   0x3   :  { %s27_s22 = sshll.u32 %s306_s21, 4  ;;  %s28_s22 = int_to_ptr.vmem [resolvable:$true] %s27_s22 }
   0x4   :  { %s248_s23 = scalar_lea.vmem %s28_s22, 128  ;;  %p253_p1 = scmp.lt.s32.totalorder %s28_s22, %s28_s22 }
   0x5   :  { %p249_p0 = scmp.ne.s32.totalorder %s28_s22, %s248_s23  ;;  %p254_p2 = scmp.lt.s32.totalorder %s248_s23, %s248_s23 }
   0x7   :  { %p255_p3 = por %p254_p2, %p253_p1 }
   0x9   :  { %p256_p4 = pnand %p255_p3, %p249_p0 }
   0xb   :  { %259 = shalt.err (!%p256_p4)
}
   0xc   :  { %30 = dma.hbm_to_vmem [thread:$0]  %s381_s3, 128, %s28_s22, [#allocation3]  }
   0xd   :  { %300 = dma.done.wait [#allocation3], 128  }
   0xe   :  { %301 = vsyncadd [#allocation3], 4294967168  ;;  %vm48_vm0 = vcmask 130048   ;;  %v36_v0 = vld [vmem:[%s378_s0] sm:$0xff]  ;;  %v43_v2 = vlaneseq  ;;  %v307_v17 = vmov 0.0   ;;  %v41_v18 = vld [vmem:[%s382_s4 + $0x8] sm:$0xff] }
   0xf   :  { %v49_v1 = vsel %vm48_vm0, %v36_v0, -inf  ;;  %222 = vmatprep.subr.mxu0 %v307_v17  ;;  %v40_v19 = vld [vmem:[%s382_s4] sm:$0xff]  ;;  %vm308_vm3 = vmmov 0  }
  0x10   :  { %50 = vmax.xlane.f32.xlu0 %v49_v1  ;;  %v71_v3 = vand.u32 127, %v43_v2  ;;  %223 = vmatpush3.msra.mxu0 %v41_v18  ;;  %v37_v22 = vld [vmem:[%s379_s1] sm:$0xff]  ;;  %v44_v40 = vshrl.u32 %v43_v2, 7  ;;  %s309_s1 = smov [#allocation5]  }
  0x11   :  { %224 = vmatprep.subr.mxu0 %v307_v17  ;;  %226 = vmatprep.mubr.msk.f32.mxu0 %vm308_vm3, %v307_v17  ;;  %vm61_vm5 = vcmp.gt.f32.partialorder %v37_v22, 0.0  ;;  %s194_s4 = sshll.u32 %s309_s1, 4  ;;  %s195_s4 = int_to_ptr.vmem [resolvable:$true] %s194_s4 }
  0x12   :  { %225 = vmatpush3.msra.mxu0 %v40_v19  ;;  %vm183_vm6 = vcmp.eq.s32.totalorder %v44_v40, 0  ;;  %s260_s8 = scalar_lea.vmem %s195_s4, 128  ;;  %p265_p6 = scmp.lt.s32.totalorder %s195_s4, %s195_s4 }
  0x13   :  { %p261_p5 = scmp.ne.s32.totalorder %s195_s4, %s260_s8  ;;  %p266_p7 = scmp.lt.s32.totalorder %s260_s8, %s260_s8 }
  0x15   :  { %p267_p8 = por %p266_p7, %p265_p6 }
  0x17   :  { %p268_p9 = pnand %p267_p8, %p261_p5 }
  0x99   :  { %v51_v4 = vpop.xlane.xlu0 %50 }
  0x9a   :  { %vm72_vm1 = vcmp.eq.f32.partialorder %v36_v0, %v51_v4  ;;  %v52_v9 = vsub.f32 %v36_v0, %v51_v4 }
  0x9b   :  { %v73_v5 = vsel %vm72_vm1, %v71_v3, 16 }
  0x9c   :  { %v74_v6 = vsel %vm48_vm0, %v73_v5, 2147483647  ;;  %v53_v10 = vmul.f32 1.442695, %v52_v9 }
  0x9d   :  { %v76_v7 = vshra.s32 %v74_v6, 16  ;;  %v75_v11 = vand.u32 65535, %v74_v6 }
  0x9e   :  { %234 = vpow2.f32 %v53_v10 }
  0x9f   :  { %v78_v8 = vcvt.s32.f32 %v76_v7  ;;  %v77_v13 = vcvt.s32.f32 %v75_v11  ;;  %236 = vlog2.f32 %v37_v22 }
  0xa1   :  { %79 = vmin.xlane.f32.xlu0 %v78_v8 }
  0xab   :  { %v235_v15 = vpop.eup %234 }
  0xac   :  { %v55_v16 = vsel %vm48_vm0, %v235_v15, 0.0  ;;  %v237_v28 = vpop.eup %236 }
  0xad   :  { %v66_v30 = vmul.f32 0.6931472, %v237_v28 }
 0x12a   :  { %v80_v12 = vpop.xlane.xlu0 %79 }
 0x12b   :  { %vm81_vm2 = vcmp.eq.f32.partialorder %v78_v8, %v80_v12  ;;  %v86_v20 = vcvt.f32.s32 %v80_v12 }
 0x12c   :  { %v82_v14 = vsel %vm81_vm2, %v77_v13, inf }
 0x12d   :  { %83 = vmin.xlane.f32.xlu1 %v82_v14  ;;  %v87_v23 = vshll.u32 %v86_v20, 16 }
 0x131   :  { %56 = vadd.xlane.f32.xlu1 %v55_v16 }
 0x1b6   :  { %v84_v21 = vpop.xlane.xlu1 %83 }
 0x1b7   :  { %v85_v24 = vcvt.f32.s32 %v84_v21 }
 0x1b9   :  { %v88_v25 = vadd.s32 %v87_v23, %v85_v24 }
 0x1ba   :  { %v57_v26 = vpop.xlane.xlu1 %56 }
 0x1bb   :  { %238 = vlog2.f32 %v57_v26  ;;  %vm89_vm4 = vcmp.eq.s32.totalorder %v71_v3, %v88_v25 }
 0x1bc   :  { %v217_v27 = vsel %vm89_vm4, 1.0, %v307_v17 }
 0x1bd   :  { %227 = vmatmul.mubr.msk.f32.vlgmr.msra.gmra.mxu0 %vm48_vm0, %v217_v27 }
 0x1c8   :  { %v239_v29 = vpop.eup %238 }
 0x1c9   :  { %v59_v31 = vmul.f32 0.6931472, %v239_v29 }
 0x1cb   :  { %v60_v32 = vsub.f32 %v52_v9, %v59_v31 }
 0x1cd   :  { %v67_v33 = vsub.f32 %v66_v30, %v60_v32 }
 0x1cf   :  { %v68_v34 = vmul.f32 %v67_v33, %v37_v22 }
 0x1d1   :  { %v69_v35 = vsel %vm61_vm5, %v68_v34, 0.0 }
 0x1d2   :  { %v168_v36 = vsel %vm48_vm0, %v69_v35, 0.0 }
 0x1d3   :  { %v169_v37 = vrot.slane %v168_v36, 4 }
 0x1d5   :  { %v170_v38 = vadd.f32 %v169_v37, %v168_v36 }
 0x1d7   :  { %v171_v39 = vrot.slane %v170_v38, 2 }
 0x1d9   :  { %v172_v41 = vadd.f32 %v171_v39, %v170_v38 }
 0x1db   :  { %v173_v42 = vrot.slane %v172_v41, 1 }
 0x1dd   :  { %v174_v43 = vadd.f32 %v173_v42, %v172_v41 }
 0x1df   :  { %v184_v44 = vsel %vm183_vm6, %v174_v43, 0.0 }
 0x1e0   :  { %185 = vst.msk [vmem:[#allocation5] sm:$0xff] %vm48_vm0, %v184_v44 }
 0x1e1   :  { %271 = shalt.err (!%p268_p9)
}
 0x1e2   :  { %197 = dma.vmem_to_hbm [thread:$0]  %s195_s4, 128, %s383_s5, [#allocation4]   ;;  %v38_v45 = vld [vmem:[%s380_s2] sm:$0xff]  ;;  %vm175_vm7 = vcmask 64512  }
 0x1e3   :  { %v39_v46 = vld [vmem:[#allocation2] sm:$0xff]  ;;  %s310_s13 = smov [#allocation6]  }
 0x1e4   :  { %s204_s14 = sshll.u32 %s310_s13, 4  ;;  %s205_s14 = int_to_ptr.vmem [resolvable:$true] %s204_s14 }
 0x1e5   :  { %s280_s2 = scalar_lea.vmem %s205_s14, 128  ;;  %p285_p11 = scmp.lt.s32.totalorder %s205_s14, %s205_s14 }
 0x1e6   :  { %p281_p10 = scmp.ne.s32.totalorder %s205_s14, %s280_s2  ;;  %p286_p12 = scmp.lt.s32.totalorder %s280_s2, %s280_s2 }
 0x1e8   :  { %p287_p13 = por %p286_p12, %p285_p11 }
 0x1ea   :  { %p288_p0 = pnand %p287_p13, %p281_p10 }
 0x27d   :  { %v161_v47 = vpop.f32.mrf.mxu0 }
 0x27e   :  { %v162_v48 = vadd.f32 %v161_v47, %v38_v45 }
 0x27f   :  { %v228_v49 = vpop.f32.mrf.mxu0 }
 0x280   :  { %v165_v50 = vsub.f32 %v162_v48, %v39_v46 }
 0x282   :  { %v166_v51 = vmul.f32 %v165_v50, %v165_v50 }
 0x284   :  { %v176_v52 = vsel %vm175_vm7, %v166_v51, 0.0 }
 0x285   :  { %v177_v53 = vrot.slane %v176_v52, 4 }
 0x287   :  { %v178_v54 = vadd.f32 %v177_v53, %v176_v52 }
 0x289   :  { %v179_v55 = vrot.slane %v178_v54, 2 }
 0x28b   :  { %v180_v56 = vadd.f32 %v179_v55, %v178_v54 }
 0x28d   :  { %v181_v57 = vrot.slane %v180_v56, 1 }
 0x28f   :  { %v182_v58 = vadd.f32 %v181_v57, %v180_v56 }
 0x291   :  { %v186_v59 = vsel %vm183_vm6, %v182_v58, 0.0 }
 0x292   :  { %187 = vst.msk [vmem:[#allocation6] sm:$0xff] %vm175_vm7, %v186_v59 }
 0x293   :  { %291 = shalt.err (!%p288_p0)
}
 0x294   :  { %207 = dma.vmem_to_hbm [thread:$0]  %s205_s14, 128, %s384_s6, [#allocation7]  }
 0x295   :  { %302 = dma.done.wait [#allocation4], 128  }
 0x296   :  { %303 = vsyncadd [#allocation4], 4294967168 }
 0x297   :  { %304 = dma.done.wait [#allocation7], 128  }
 0x298   :  { %305 = vsyncadd [#allocation7], 4294967168 }
 0x299   :  { %214 = vsyncpa [#allocation3], 1 }
 0x29a   :  { %215 = vsyncpa [#allocation4], 1 }
 0x29b   :  { %216 = vsyncpa [#allocation7], 1 }

</bundles_post_ra>
